<compile_context>
chip_gen: v7x
topology: tpu7x:2x2x1
jax: 0.10.0
libtpu: 0.0.40
codegen_flags: <defaults>
</compile_context>

<pallas_src>
import functools
import math

import jax
import jax.numpy as jnp
from jax.experimental import pallas as pl
from jax.experimental.pallas import tpu as pltpu


def make_positional_encoding_table(d_model: int, max_len: int) -> jnp.ndarray:
    """Deterministic buffer setup mirroring PositionalEncoding.__init__ (plain JAX glue)."""
    position = jnp.arange(0, max_len, dtype=jnp.float32)[:, None]            # (max_len, 1)
    div_term = jnp.exp(jnp.arange(0, d_model, 2, dtype=jnp.float32)
                       * (-math.log(10000.0) / d_model))                     # (d_model/2,)
    pe = jnp.zeros((max_len, d_model), dtype=jnp.float32)
    pe = pe.at[:, 0::2].set(jnp.sin(position * div_term))
    pe = pe.at[:, 1::2].set(jnp.cos(position * div_term))
    return pe[:, None, :]                                                    # (max_len, 1, d_model)


def _pos_enc_kernel(x_ref, pe_ref, *rest, batch, dropout_p, apply_dropout):
    """x_ref: (TS, B*D); pe_ref: (TS, D); optional bits_ref: (TS, B*D) uint32; o_ref: (TS, B*D)."""
    if apply_dropout:
        bits_ref, o_ref = rest
    else:
        (o_ref,) = rest

    x = x_ref[...].astype(jnp.float32)            # keep math in f32 even for bf16 inputs (v5e)
    pe = pe_ref[...]                              # (TS, D) f32
    pe_b = jnp.tile(pe, (1, batch))               # (TS, B*D): repeat across the batch lanes
    y = x + pe_b

    if apply_dropout:
        # Inverted-scale dropout.  Random bits are streamed in (generated with
        # jax.random in the wrapper), so each tile automatically gets an
        # independent mask and the kernel also runs under interpret mode.
        # TODO(synk): not bit-identical to torch's dropout RNG stream.
        thresh = jnp.uint32(min(int(dropout_p * (2 ** 32)), 2 ** 32 - 1))
        keep = bits_ref[...] >= thresh
        y = jnp.where(keep, y * jnp.float32(1.0 / (1.0 - dropout_p)), jnp.float32(0.0))

    o_ref[...] = y.astype(o_ref.dtype)


def _choose_seq_tile(S, lane_width, itemsize=4, target_tile_bytes=4 * 1024 * 1024):
    """Rows (seq positions) per tile: ~4 MiB per x tile so that double-buffered
    x + out (+ dropout bits) stays well under VMEM on v5e/v6e (128 MiB) and v7x (64 MiB)."""
    row_bytes = max(1, lane_width * int(itemsize))
    ts = max(1, target_tile_bytes // row_bytes)
    if ts >= S:
        return S                                  # full array block: always legal
    return min(S, max(8, (ts // 8) * 8))          # sublane dim must be a multiple of 8


def positional_encoding(x, pe_table, *, dropout_p=0.1, training=False, rng_key=None):
    """Forward of PositionalEncoding.  x: (S, B, D); pe_table: (max_len, 1, D)."""
    S, B, D = x.shape
    BD = B * D
    x2 = x.reshape(S, BD)                         # free: row-major contiguous view
    pe2 = pe_table[:S, 0, :]                      # (S, D)  ==  self.pe[:x.size(0), :]

    ts = _choose_seq_tile(S, BD, itemsize=x.dtype.itemsize)
    grid = (pl.cdiv(S, ts),)

    apply_dropout = bool(training) and float(dropout_p) > 0.0
    kernel = functools.partial(_pos_enc_kernel, batch=B,
                               dropout_p=float(dropout_p),
                               apply_dropout=apply_dropout)

    in_specs = [pl.BlockSpec((ts, BD), lambda i: (i, 0)),    # x slab tile
                pl.BlockSpec((ts, D), lambda i: (i, 0))]     # pe tile (1/B of x traffic)
    args = [x2, pe2]
    if apply_dropout:
        if rng_key is None:
            rng_key = jax.random.PRNGKey(0)
        bits = jax.random.bits(rng_key, (S, BD), dtype=jnp.uint32)
        in_specs.append(pl.BlockSpec((ts, BD), lambda i: (i, 0)))
        args.append(bits)

    y2 = pl.pallas_call(
        kernel,
        out_shape=jax.ShapeDtypeStruct((S, BD), x.dtype),
        grid=grid,
        in_specs=in_specs,
        out_specs=pl.BlockSpec((ts, BD), lambda i: (i, 0)),
        compiler_params=pltpu.CompilerParams(
            dimension_semantics=("parallel",),     # no reduction axis; megacore on v7x
            vmem_limit_bytes=48 * 1024 * 1024,     # ~24 MiB live when double-buffered
        ),
    )(*args)
    return y2.reshape(S, B, D)


if __name__ == "__main__":
    key = jax.random.PRNGKey(0)
    S, B, D = 8, 2, 32            # (seq_len, batch, d_model)
    MAX_LEN = 64

    x = jax.random.normal(key, (S, B, D), dtype=jnp.float32)
    pe_table = make_positional_encoding_table(D, MAX_LEN)

    # Eval-mode forward (dropout is identity), deterministic.
    y = positional_encoding(x, pe_table, dropout_p=0.1, training=False)
    jax.block_until_ready(y)

    ref = x + pe_table[:S]
    assert y.shape == (S, B, D) and y.dtype == x.dtype
    assert jnp.allclose(y, ref, atol=1e-6), "eval-path mismatch vs reference"

    # Training-mode forward (inverted-scale dropout): kept entries must equal
    # (x + pe) / (1 - p) and dropped entries must be exactly zero.
    p = 0.1
    y_tr = positional_encoding(x, pe_table, dropout_p=p, training=True,
                               rng_key=jax.random.PRNGKey(123))
    jax.block_until_ready(y_tr)
    kept = y_tr != 0.0
    assert jnp.allclose(jnp.where(kept, y_tr, 0.0),
                        jnp.where(kept, ref / (1.0 - p), 0.0),
                        atol=1e-5, rtol=1e-5), "training-path kept values mismatch"

    print("KERNEL_OK")
</pallas_src>

<mosaic_0001>
module attributes {stable_mosaic.version = 11 : i64} {
  func.func @_pos_enc_kernel(%arg0: i32, %arg1: memref<8x64xf32, #tpu.memory_space<vmem>>, %arg2: memref<8x32xf32, #tpu.memory_space<vmem>>, %arg3: memref<8x64xf32, #tpu.memory_space<vmem>>) attributes {dimension_semantics = [#tpu.dimension_semantics<parallel>], iteration_bounds = array<i64: 1>, scalar_prefetch = 0 : i64, scratch_operands = 0 : i64, tpu.core_type = #tpu.core_type<tc>, window_params = [{transform_indices = @transform_0, window_bounds = array<i64: 8, 64>}, {transform_indices = @transform_1, window_bounds = array<i64: 8, 32>}, {transform_indices = @transform_2, window_bounds = array<i64: 8, 64>}]} {
    %c0 = arith.constant 0 : index
    %c0_0 = arith.constant 0 : index
    %0 = vector.load %arg1[%c0, %c0_0] : memref<8x64xf32, #tpu.memory_space<vmem>>, vector<8x64xf32>
    %c0_1 = arith.constant 0 : index
    %c0_2 = arith.constant 0 : index
    %1 = vector.load %arg2[%c0_1, %c0_2] : memref<8x32xf32, #tpu.memory_space<vmem>>, vector<8x32xf32>
    %2 = tpu.concatenate %1, %1 in 1 : vector<8x32xf32>, vector<8x32xf32> -> vector<8x64xf32>
    %3 = arith.addf %0, %2 : vector<8x64xf32>
    %c0_3 = arith.constant 0 : index
    %c0_4 = arith.constant 0 : index
    %4 = vector.load %arg3[%c0_3, %c0_4] : memref<8x64xf32, #tpu.memory_space<vmem>>, vector<8x64xf32>
    tpu.vector_store %arg3[%c0_3, %c0_4], %3 {strides = array<i32>} : memref<8x64xf32, #tpu.memory_space<vmem>>, vector<8x64xf32>,
    return
  }
  func.func @transform_0(%arg0: i32) -> (i32, i32) {
    %c0_i32 = arith.constant 0 : i32
    %c0_i32_0 = arith.constant 0 : i32
    return %arg0, %c0_i32 : i32, i32
  }
  func.func @transform_1(%arg0: i32) -> (i32, i32) {
    %c0_i32 = arith.constant 0 : i32
    %c0_i32_0 = arith.constant 0 : i32
    return %arg0, %c0_i32 : i32, i32
  }
  func.func @transform_2(%arg0: i32) -> (i32, i32) {
    %c0_i32 = arith.constant 0 : i32
    %c0_i32_0 = arith.constant 0 : i32
    return %arg0, %c0_i32 : i32, i32
  }
}

</mosaic_0001>

<bundles_post_ra>
// kernel: tpu_custom_call.1
= control target key start
LH: loop header
LB: loop body
LE: loop exit
PB: predicated region body
PF: predicated region fallthrough
CT: control target
= control target key end

     0   :  { %7 = vsyncpa [#allocation3], 0  ;;  %s194_s0 = inlined_call_operand.hbm [shape: f32[8,64], index: 0, kind: input, shape index: {}]   ;;  %s195_s1 = inlined_call_operand.hbm [shape: f32[8,32], index: 1, kind: input, shape index: {}]   ;;  %s196_s2 = inlined_call_operand.hbm [shape: f32[8,64], index: 2, kind: output, shape index: {}]  }
   0x1   :  { %8 = vsyncpa [#allocation6], 0 }
   0x2   :  { %9 = vsyncpa [#allocation4], 0  ;;  %s139_s9 = smov [#allocation2]   ;;  %s140_s11 = smov [#allocation5]  }
   0x3   :  { %s16_s10 = sshll.u32 %s139_s9, 4  ;;  %s26_s12 = sshll.u32 %s140_s11, 4  ;;  %s17_s10 = int_to_ptr.vmem [resolvable:$true] %s16_s10  ;;  %s27_s12 = int_to_ptr.vmem [resolvable:$true] %s26_s12 }
   0x4   :  { %s67_s15 = scalar_lea.hbm %s194_s0, 128 }
   0x5   :  { %p68_p0 = scmp.ne.s32.totalorder %s194_s0, %s67_s15  ;;  %p71_p1 = scmp.lt.u32.totalorder %s67_s15, %s194_s0 }
   0x7   :  { %p73_p2 = pnand %p71_p1, %p68_p0 }
   0x9   :  { %76 = shalt.err (!%p73_p2)
}
   0xa   :  { %s77_s20 = scalar_lea.vmem %s17_s10, 128  ;;  %p82_p4 = scmp.lt.s32.totalorder %s17_s10, %s17_s10 }
   0xb   :  { %p78_p3 = scmp.ne.s32.totalorder %s17_s10, %s77_s20  ;;  %p83_p5 = scmp.lt.s32.totalorder %s77_s20, %s77_s20 }
   0xd   :  { %p84_p6 = por %p83_p5, %p82_p4 }
   0xf   :  { %p85_p7 = pnand %p84_p6, %p78_p3 }
  0x11   :  { %88 = shalt.err (!%p85_p7)
}
  0x12   :  { %19 = dma.hbm_to_vmem [thread:$0]  %s194_s0, 128, %s17_s10, [#allocation3]  }
  0x13   :  { %s89_s25 = scalar_lea.hbm %s195_s1, 128 }
  0x14   :  { %p90_p8 = scmp.ne.s32.totalorder %s195_s1, %s89_s25  ;;  %p93_p9 = scmp.lt.u32.totalorder %s89_s25, %s195_s1 }
  0x16   :  { %p95_p10 = pnand %p93_p9, %p90_p8 }
  0x18   :  { %98 = shalt.err (!%p95_p10)
}
  0x19   :  { %s99_s30 = scalar_lea.vmem %s27_s12, 128  ;;  %p104_p12 = scmp.lt.s32.totalorder %s27_s12, %s27_s12 }
  0x1a   :  { %p100_p11 = scmp.ne.s32.totalorder %s27_s12, %s99_s30  ;;  %p105_p13 = scmp.lt.s32.totalorder %s99_s30, %s99_s30 }
  0x1c   :  { %p106_p0 = por %p105_p13, %p104_p12 }
  0x1e   :  { %p107_p1 = pnand %p106_p0, %p100_p11 }
  0x20   :  { %110 = shalt.err (!%p107_p1)
}
  0x21   :  { %29 = dma.hbm_to_vmem [thread:$0]  %s195_s1, 128, %s27_s12, [#allocation6]  }
  0x22   :  { %133 = dma.done.wait [#allocation3], 128  }
  0x23   :  { %134 = vsyncadd [#allocation3], 4294967168 }
  0x24   :  { %135 = dma.done.wait [#allocation6], 128  }
  0x25   :  { %136 = vsyncadd [#allocation6], 4294967168  ;;  %v37_v0 = vld [vmem:[#allocation5] sm:$0xff]  ;;  %s141_s4 = smov 32   ;;  %vm42_vm0 = vcmask 261120   ;;  %v36_v1 = vld [vmem:[#allocation2] sm:$0xff] }
  0x26   :  { %39 = vrot.lane.b32.xlu0 %v37_v0, %s141_s4  ;;  %s142_s5 = smov [#allocation7]   ;;  %vm45_vm1 = vcmask 523264  }
  0x27   :  { %s53_s6 = sshll.u32 %s142_s5, 4  ;;  %s54_s6 = int_to_ptr.vmem [resolvable:$true] %s53_s6 }
  0x28   :  { %s111_s7 = scalar_lea.vmem %s54_s6, 128  ;;  %p116_p3 = scmp.lt.s32.totalorder %s54_s6, %s54_s6 }
  0x29   :  { %p112_p2 = scmp.ne.s32.totalorder %s54_s6, %s111_s7  ;;  %p117_p4 = scmp.lt.s32.totalorder %s111_s7, %s111_s7 }
  0x2b   :  { %p118_p5 = por %p117_p4, %p116_p3 }
  0x2d   :  { %p119_p6 = pnand %p118_p5, %p112_p2 }
  0x98   :  { %v40_v2 = vpop.permute.xlu0 %39 }
  0x99   :  { %v43_v3 = vsel %vm42_vm0, %v37_v0, %v40_v2 }
  0x9a   :  { %v44_v4 = vadd.f32 %v43_v3, %v36_v1 }
  0x9c   :  { %46 = vst.msk [vmem:[#allocation7] sm:$0xff] %vm45_vm1, %v44_v4 }
  0x9d   :  { %122 = shalt.err (!%p119_p6)
}
  0x9e   :  { %s123_s9 = scalar_lea.hbm %s196_s2, 128 }
  0x9f   :  { %p124_p7 = scmp.ne.s32.totalorder %s196_s2, %s123_s9  ;;  %p127_p8 = scmp.lt.u32.totalorder %s123_s9, %s196_s2 }
  0xa1   :  { %p129_p9 = pnand %p127_p8, %p124_p7 }
  0xa3   :  { %132 = shalt.err (!%p129_p9)
}
  0xa4   :  { %56 = dma.vmem_to_hbm [thread:$0]  %s54_s6, 128, %s196_s2, [#allocation4]  }
  0xa5   :  { %137 = dma.done.wait [#allocation4], 128  }
  0xa6   :  { %138 = vsyncadd [#allocation4], 4294967168 }
  0xa7   :  { %60 = vsyncpa [#allocation3], 1 }
  0xa8   :  { %61 = vsyncpa [#allocation6], 1 }
  0xa9   :  { %62 = vsyncpa [#allocation4], 1 }

</bundles_post_ra>
